<compile_context>
chip_gen: v7x
topology: tpu7x:2x2x1
jax: 0.10.0
libtpu: 0.0.40
codegen_flags: <defaults>
</compile_context>

<pallas_src>
import jax
import jax.numpy as jnp
from jax.experimental import pallas as pl
from jax.experimental.pallas import tpu as pltpu


# ---------------------------------------------------------------------------
# Kernel: one (frame, spatial-tile) block per grid step.
# ---------------------------------------------------------------------------
def _projection_kernel(x_ref, w_ref, b_ref, o_ref):
    # x_ref: (Cin, S)   w_ref: (Cout, Cin)   b_ref: (Cout, 1)   o_ref: (Cout, S)
    y = jnp.dot(
        w_ref[...], x_ref[...],
        preferred_element_type=jnp.float32,
        precision=jax.lax.Precision.HIGHEST)
    y = y + b_ref[...]                       # bias kept/added in f32
    o_ref[...] = y.astype(o_ref.dtype)


# ---------------------------------------------------------------------------
# Chip-aware / core-aware tiling helpers.
# ---------------------------------------------------------------------------
def _chip_vmem_bytes():
    """Physical VMEM capacity (falls back to a v7x-sized 64 MiB)."""
    try:
        return int(pltpu.get_tpu_info().vmem_capacity_bytes)
    except Exception:
        return 64 << 20


def _pick_spatial_block(hw_padded, cin, itemsize, n_frames,
                        target_in_bytes, min_blocks=4):
    """Largest lane block (multiple of 128 dividing hw_padded) such that
    (a) the input tile stays under target_in_bytes and
    (b) the grid has >= min_blocks blocks (keeps both v7x TensorCores busy)
        whenever the total amount of work allows it."""
    nb = hw_padded // 128
    want_blocks = min(min_blocks, n_frames * nb)
    best = 128
    for k in range(nb, 0, -1):
        if nb % k:
            continue
        s = 128 * k
        if s * cin * itemsize > target_in_bytes:
            continue
        if n_frames * (nb // k) < want_blocks:
            continue
        best = s
        break
    return best


# ---------------------------------------------------------------------------
# Wrapper (matches Projection.forward: 4-D single-frame or 5-D time-series).
# ---------------------------------------------------------------------------
def projection_forward(x, weight, bias):
    """1x1 conv with bias.

    x      : (B, T, Cin, H, W) or (N, Cin, H, W)   [NCHW, PyTorch convention]
    weight : (Cout, Cin)   (PyTorch (Cout, Cin, 1, 1) squeezed)
    bias   : (Cout,)

    Output dtype follows x.dtype (pass bf16 activations for ~2x less HBM
    traffic; results then differ from the f32 module by bf16 rounding on store).
    """
    time_series = (x.ndim == 5)
    if time_series:
        B, T = x.shape[:2]
        x = x.reshape((B * T,) + x.shape[2:])

    N, Cin, H, W = x.shape
    Cout = weight.shape[0]
    HW = H * W

    # Free reshape: channels on sublanes, spatial on the 128-lane axis.
    x_flat = x.reshape(N, Cin, HW)
    # Pad the spatial (lane) axis to a multiple of 128 so every tile is
    # lane-dense and the grid pipelines (no single full-frame fallback block).
    HW_pad = ((HW + 127) // 128) * 128
    if HW_pad != HW:
        x_flat = jnp.pad(x_flat, ((0, 0), (0, 0), (0, HW_pad - HW)))

    # Exact tiles the kernel consumes.  Weights follow the activation dtype
    # (bf16 activations -> bf16 MXU operands); bias stays f32 for accumulation.
    w = weight.reshape(Cout, Cin).astype(x.dtype)
    b = bias.reshape(Cout, 1).astype(jnp.float32)

    itemsize = jnp.dtype(x.dtype).itemsize
    phys_vmem = _chip_vmem_bytes()

    # Scoped-VMEM budget ~= 1/4 of physical (conservative on v7x's 64 MiB,
    # generous on v5e/v6e's 128 MiB), split across double-buffered input +
    # output tiles with headroom for the f32 intermediate / Mosaic scratch.
    scoped = max(16 << 20, phys_vmem // 4)
    target_in = (scoped - (4 << 20)) * Cin // (2 * (Cin + Cout))
    target_in = int(max(128 * Cin * itemsize, min(8 << 20, target_in)))

    s_blk = _pick_spatial_block(HW_pad, Cin, itemsize, N, target_in)
    grid = (N, HW_pad // s_blk)

    # Explicit VMEM limit derived from the actual double-buffered footprint.
    in_tile = s_blk * Cin * itemsize
    out_tile = s_blk * Cout * itemsize
    acc_tile = s_blk * Cout * 4                      # f32 intermediate
    footprint = 2 * (in_tile + out_tile) + acc_tile + (Cout * Cin + Cout) * 4
    vmem_limit = int(min(phys_vmem // 2, max(24 << 20, footprint + (8 << 20))))

    cost = pl.CostEstimate(
        flops=2 * N * Cout * Cin * HW_pad,
        bytes_accessed=(N * Cin * HW_pad + N * Cout * HW_pad) * itemsize
        + (Cout * Cin + Cout) * 4,
        transcendentals=0)

    out_flat = pl.pallas_call(
        _projection_kernel,
        out_shape=jax.ShapeDtypeStruct((N, Cout, HW_pad), x.dtype),
        grid=grid,
        in_specs=[
            # frame n, spatial tile s; N-dim squeezed away inside the kernel
            pl.BlockSpec((None, Cin, s_blk), lambda n, s: (n, 0, s)),
            pl.BlockSpec((Cout, Cin), lambda n, s: (0, 0)),
            pl.BlockSpec((Cout, 1), lambda n, s: (0, 0)),
        ],
        out_specs=pl.BlockSpec((None, Cout, s_blk), lambda n, s: (n, 0, s)),
        compiler_params=pltpu.CompilerParams(
            dimension_semantics=("parallel", "parallel"),
            vmem_limit_bytes=vmem_limit),
        cost_estimate=cost,
    )(x_flat, w, b)

    out = out_flat[:, :, :HW].reshape(N, Cout, H, W)
    if time_series:
        out = out.reshape((B, T) + out.shape[1:])
    return out


def make_params(key, in_channels, out_channels):
    """Deterministic synthetic Conv2d(1x1) parameters (no checkpoint load)."""
    kw, kb = jax.random.split(key, 2)
    weight = 0.1 * jax.random.normal(kw, (out_channels, in_channels), jnp.float32)
    bias = 0.1 * jax.random.normal(kb, (out_channels,), jnp.float32)
    return weight, bias


if __name__ == "__main__":
    # Shapes consistent with the matting decoder's Projection(16, 4).
    B, T, Cin, Cout, H, W = 2, 2, 16, 4, 16, 16

    key = jax.random.PRNGKey(0)
    kx, kp, kq = jax.random.split(key, 3)

    x = jax.random.normal(kx, (B, T, Cin, H, W), jnp.float32)
    weight, bias = make_params(kp, Cin, Cout)

    ref = jnp.einsum("oc,btchw->btohw", weight, x,
                     precision=jax.lax.Precision.HIGHEST) \
        + bias.reshape(1, 1, -1, 1, 1)

    # Time-series path (x.ndim == 5), matching forward_time_series.
    out = jax.block_until_ready(projection_forward(x, weight, bias))
    assert out.shape == (B, T, Cout, H, W), out.shape
    assert jnp.all(jnp.isfinite(out))
    assert jnp.allclose(out, ref, atol=1e-4, rtol=1e-4), float(
        jnp.max(jnp.abs(out - ref)))

    # Single-frame path (x.ndim == 4), matching forward_single_frame.
    out4 = jax.block_until_ready(projection_forward(x[:, 0], weight, bias))
    assert out4.shape == (B, Cout, H, W), out4.shape
    assert jnp.allclose(out4, ref[:, 0], atol=1e-4, rtol=1e-4)

    # bf16 activation path (halved HBM traffic; output follows input dtype).
    x_bf16 = x.astype(jnp.bfloat16)
    out_bf16 = jax.block_until_ready(projection_forward(x_bf16, weight, bias))
    assert out_bf16.dtype == jnp.bfloat16
    assert jnp.allclose(out_bf16.astype(jnp.float32), ref, atol=5e-2, rtol=5e-2)

    # Odd spatial size (HW % 128 != 0) exercises the padding path.
    x_odd = jax.random.normal(kq, (2, Cin, 9, 9), jnp.float32)
    ref_odd = jnp.einsum("oc,nchw->nohw", weight, x_odd,
                         precision=jax.lax.Precision.HIGHEST) \
        + bias.reshape(1, -1, 1, 1)
    out_odd = jax.block_until_ready(projection_forward(x_odd, weight, bias))
    assert out_odd.shape == (2, Cout, 9, 9), out_odd.shape
    assert jnp.allclose(out_odd, ref_odd, atol=1e-4, rtol=1e-4)

    print("KERNEL_OK")
</pallas_src>

<mosaic_0001>
module attributes {stable_mosaic.version = 11 : i64} {
  func.func @_projection_kernel(%arg0: i32, %arg1: i32, %arg2: memref<1x16x256xf32, #tpu.memory_space<vmem>>, %arg3: memref<4x16xf32, #tpu.memory_space<vmem>>, %arg4: memref<4x1xf32, #tpu.memory_space<vmem>>, %arg5: memref<1x4x256xf32, #tpu.memory_space<vmem>>) attributes {dimension_semantics = [#tpu.dimension_semantics<parallel>, #tpu.dimension_semantics<parallel>], iteration_bounds = array<i64: 4, 1>, scalar_prefetch = 0 : i64, scratch_operands = 0 : i64, tpu.core_type = #tpu.core_type<tc>, window_params = [{transform_indices = @transform_0, window_bounds = array<i64: 1, 16, 256>}, {pipeline_mode = #tpu.pipeline_mode<synchronous>, transform_indices = @transform_1, window_bounds = array<i64: 4, 16>}, {pipeline_mode = #tpu.pipeline_mode<synchronous>, transform_indices = @transform_2, window_bounds = array<i64: 4, 1>}, {transform_indices = @transform_3, window_bounds = array<i64: 1, 4, 256>}]} {
    %c0 = arith.constant 0 : index
    %c0_0 = arith.constant 0 : index
    %0 = vector.load %arg3[%c0, %c0_0] : memref<4x16xf32, #tpu.memory_space<vmem>>, vector<4x16xf32>
    %c0_1 = arith.constant 0 : index
    %c0_2 = arith.constant 0 : index
    %c0_3 = arith.constant 0 : index
    %1 = vector.load %arg2[%c0_1, %c0_2, %c0_3] : memref<1x16x256xf32, #tpu.memory_space<vmem>>, vector<1x16x256xf32>
    %2 = vector.shape_cast %1 : vector<1x16x256xf32> to vector<16x256xf32>
    %cst = arith.constant dense<0.000000e+00> : vector<4x256xf32>
    %3 = tpu.matmul %0, %2, %cst {dimension_numbers = #tpu.dot_dimension_numbers<[1], [0], [0], [1], [0, 0, 1, 1], [], []>, precision = #tpu.contract_precision<fp32>} : vector<4x16xf32>, vector<16x256xf32>, vector<4x256xf32> -> vector<4x256xf32>
    %c0_4 = arith.constant 0 : index
    %c0_5 = arith.constant 0 : index
    %4 = vector.load %arg4[%c0_4, %c0_5] : memref<4x1xf32, #tpu.memory_space<vmem>>, vector<4x1xf32>
    %5 = vector.broadcast %4 : vector<4x1xf32> to vector<4x256xf32>
    %6 = arith.addf %3, %5 : vector<4x256xf32>
    %c0_6 = arith.constant 0 : index
    %c0_7 = arith.constant 0 : index
    %c0_8 = arith.constant 0 : index
    %7 = vector.load %arg5[%c0_6, %c0_7, %c0_8] : memref<1x4x256xf32, #tpu.memory_space<vmem>>, vector<1x4x256xf32>
    %8 = vector.shape_cast %7 : vector<1x4x256xf32> to vector<4x256xf32>
    %9 = vector.shape_cast %6 : vector<4x256xf32> to vector<1x4x256xf32>
    tpu.vector_store %arg5[%c0_6, %c0_7, %c0_8], %9 {strides = array<i32>} : memref<1x4x256xf32, #tpu.memory_space<vmem>>, vector<1x4x256xf32>,
    return
  }
  func.func @transform_0(%arg0: i32, %arg1: i32) -> (i32, i32, i32) {
    %c0_i32 = arith.constant 0 : i32
    %c0_i32_0 = arith.constant 0 : i32
    return %arg0, %c0_i32, %arg1 : i32, i32, i32
  }
  func.func @transform_1(%arg0: i32, %arg1: i32) -> (i32, i32) {
    %c0_i32 = arith.constant 0 : i32
    %c0_i32_0 = arith.constant 0 : i32
    %c0_i32_1 = arith.constant 0 : i32
    return %c0_i32, %c0_i32_0 : i32, i32
  }
  func.func @transform_2(%arg0: i32, %arg1: i32) -> (i32, i32) {
    %c0_i32 = arith.constant 0 : i32
    %c0_i32_0 = arith.constant 0 : i32
    %c0_i32_1 = arith.constant 0 : i32
    return %c0_i32, %c0_i32_0 : i32, i32
  }
  func.func @transform_3(%arg0: i32, %arg1: i32) -> (i32, i32, i32) {
    %c0_i32 = arith.constant 0 : i32
    %c0_i32_0 = arith.constant 0 : i32
    return %arg0, %c0_i32, %arg1 : i32, i32, i32
  }
}

</mosaic_0001>

<bundles_post_ra>
// kernel: tpu_custom_call.1
= control target key start
LH: loop header
LB: loop body
LE: loop exit
PB: predicated region body
PF: predicated region fallthrough
CT: control target
= control target key end

     0   :  { %8 = vsyncpa [#allocation3], 0  ;;  %s1265_s0 = inlined_call_operand.hbm [shape: f32[4,16,256], index: 0, kind: input, shape index: {}]   ;;  %s1266_s1 = inlined_call_operand.vmem [shape: f32[4,16], index: 1, kind: input, shape index: {}]   ;;  %s1267_s2 = inlined_call_operand.vmem [shape: f32[4,1], index: 2, kind: input, shape index: {}]   ;;  %s1268_s3 = inlined_call_operand.hbm [shape: f32[4,4,256], index: 3, kind: output, shape index: {}]  }
   0x1   :  { %10 = vsyncpa [#allocation3 + $0x1], 0 }
   0x2   :  { %11 = vsyncpa [#allocation4], 0 }
   0x3   :  { %13 = vsyncpa [#allocation4 + $0x1], 0  ;;  %s1081_s12 = smov 0   ;;  %s1083_s13 = smov 0  }
   0x4   :  { %s1085_s14 = smov 0   ;;  %s1087_s15 = smov 0  }
   0x5   :  { %s1089_s16 = smov 0   ;;  %s1091_s17 = smov 0  }
   0x6 LB: > { %s821_s18 = sadd.s32 4294967295, %s1053_s17   ;;  %s822_s19 = sadd.s32 4294967294, %s1053_s17   ;;  %s1053_s17 = sphi %s1091_s17, %s19_s17   ;;  %s1049_s16 = sphi %s1089_s16, %s1282_s16   ;;  %s1045_s15 = sphi %s1087_s15, %s1281_s15   ;;  %s1041_s14 = sphi %s1085_s14, %s1280_s14   ;;  %s1037_s13 = sphi %s1083_s13, %s1279_s13   ;;  %s1033_s12 = sphi %s1081_s12, %s1278_s12  }
   0x7   : > { %s31_s20 = sadd.s32 1, %s1049_s16  ;;  %s40_s21 = sadd.s32 1, %s1041_s14 }
   0x8   : > { %p33_p0 = scmp.ge.s32.totalorder %s31_s20, 4  ;;  %p47_p1 = scmp.ne.s32.totalorder %s1041_s14, %s1037_s13 }
   0x9   : > { %p48_p2 = scmp.eq.s32.totalorder %s1053_s17, 0  ;;  %p53_p3 = scmp.ne.s32.totalorder %s1037_s13, %s1033_s12 }
   0xa   : > { %s1284_s20 = smov (%p33_p0, %s31_s20), 0  ;;  %p54_p5 = scmp.eq.s32.totalorder %s821_s18, 0 }
   0xb   : > { %p1122_p4 = por %p48_p2, %p47_p1  ;;  %s35_s23 = ssub.s32 %s1049_s16, %s1284_s20 }
   0xc   : > { %p121_p6 = scmp.eq.s32.totalorder %s821_s18, 3  ;;  %p38_p7 = scmp.eq.s32.totalorder %s35_s23, 0 }
   0xd   : > { %p1128_p8 = por %p54_p5, %p53_p3  ;;  %p127_p10 = scmp.eq.s32.totalorder %s822_s19, 3 }
   0xe   : > { %p1132_p9 = por %p121_p6, %p47_p1  ;;  %p886_p12 = scmp.lt.s32.totalorder %s1053_s17, 4 }
   0xf   : > { %s1137_s26 = scalar_select %p38_p7, %s1041_s14, %s40_s21  }
  0x10   : > { %s1272_s25 = scalar_select %p1132_p9, 1, 0 }
  0x11   : > { %p1139_p11 = por %p127_p10, %p53_p3  ;;  %s153_s28 = sand.u32 1, %s1041_s14  }
  0x12   : > { %s825_s29 = sshll.u32 %s153_s28, 5  ;;  %s836_s30 = sshll.u32 %s1049_s16, 9 }
  0x13   : > { %s1273_s27 = scalar_select %p1139_p11, 1, 0 }
  0x14   : > { %s1149_s6 = scalar_lea.hbm %s1265_s0, %s836_s30  ;;  %s157_s7 = scalar_lea.vmem [#allocation2], %s825_s29 }
  0x15   : > { %s166_s8 = sshll.u32 %s157_s7, 4  ;;  %p1155_p13 = pnand %p886_p12, %p1122_p4  ;;  %s1151_s8 = int_to_ptr.vmem [resolvable:$true] %s166_s8 }
  0x16   : > { %s1160_s10 = scalar_lea.sflag [#allocation3], %s153_s28  ;;  %s941_s11 = scalar_lea.hbm %s1149_s6, 512 }
  0x17   : > { %p942_p1 = scmp.ne.s32.totalorder %s1149_s6, %s941_s11  ;;  %p943_p2 = pneg %p1155_p13 }
  0x18   : > { %s946_s21 = scalar_lea.hbm %s1265_s0, 2048  ;;  %p947_p4 = scmp.lt.u32.totalorder %s1149_s6, %s1265_s0 }
  0x19   : > { %p944_p3 = pnand %p943_p2, %p942_p1  ;;  %p948_p6 = scmp.lt.u32.totalorder %s946_s21, %s941_s11 }
  0x1a   : > { %p950_p10 = scmp.lt.u32.totalorder %s941_s11, %s1149_s6 }
  0x1b   : > { %p945_p5 = pneg %p944_p3  ;;  %p949_p7 = por %p948_p6, %p947_p4 }
  0x1d   : > { %p951_p12 = por %p950_p10, %p949_p7 }
  0x1f   : > { %p952_p0 = pnand %p951_p12, %p945_p5 }
  0x21   : > { %955 = shalt.err (!%p952_p0)
}
  0x22   : > { %s956_s28 = scalar_lea.vmem %s1151_s8, 512  ;;  %s1055_s29 = smov [#allocation2]  }
  0x23   : > { %p957_p1 = scmp.ne.s32.totalorder %s1151_s8, %s956_s28  ;;  %s961_s30 = sshll.u32 %s1055_s29, 4  ;;  %s962_s30 = int_to_ptr.vmem [resolvable:$false] %s961_s30 }
  0x24   : > { %s963_s4 = scalar_lea.vmem %s962_s30, 1024  ;;  %p964_p9 = scmp.lt.s32.totalorder %s1151_s8, %s962_s30 }
  0x25   : > { %p959_p3 = pnand %p957_p1, %p943_p2  ;;  %p965_p4 = scmp.lt.s32.totalorder %s963_s4, %s956_s28 }
  0x27   : > { %p960_p11 = pneg %p959_p3  ;;  %p966_p6 = por %p965_p4, %p964_p9 }
  0x29   : > { %p967_p7 = pnand %p966_p6, %p960_p11 }
  0x2b   : > { %970 = shalt.err (!%p967_p7)
}
  0x2c   : > { %s1056_s5 = smov 256   ;;  %s1057_s7 = smov 16  }
  0x2d   : > { %881 = dma.hbm_to_vmem [thread:$0]  (!%p1155_p13), %s1149_s6, 512, %s1151_s8, %s1160_s10, %s1056_s5, %s1056_s5, %s1057_s7  }
  0x2e   : > { %p174_p0 = scmp.lt.s32.totalorder %s1053_s17, 5  ;;  %p1275_p2 = scmp.ge.s32.totalorder %s1053_s17, 1 }
  0x30   : > { %p175_p5 = pnand %p1275_p2, %p174_p0 }
  0x31   : > { %s1192_s11 = sand.u32 (!%p175_p5), 1, %s1037_s13  }
  0x32   : > { %178 = sbr.rel (%p175_p5) target bundleno = 321 (0x141), region = 32  ;;  %s829_s18 = sshll.u32 (!%p175_p5), %s1192_s11, 5 }
  0x33   : > { %s181_s19 = scalar_lea.sflag (!%p175_p5), [#allocation3], %s1192_s11  ;;  %s184_s21 = scalar_lea.vmem (!%p175_p5), [#allocation2], %s829_s18 }
  0x39   : > { %1024 = dma.done.wait (%p1128_p8), %s181_s19, 512  }
  0x3a   : > { %1026 = vsyncadd (%p1128_p8), %s181_s19, 4294966784  ;;  %v1058_v0 = vmov 0.0   ;;  %v1059_v1 = vmov 0   ;;  %vm220_vm0 = vcmask 130048   ;;  %v211_v2 = vld [vmem:[%s184_s21 + $0x8] sm:$0xff]  ;;  %v213_v3 = vld [vmem:[%s184_s21 + $0x18] sm:$0xff] }
  0x3b   : > { %545 = vmatprep.mubr.f32.mxu0 %v1058_v0  ;;  %292 = vmatprep.mubr.f32.mxu1 %v1058_v0  ;;  %v210_v4 = vld [vmem:[%s184_s21] sm:$0xff]  ;;  %v224_v5 = vand.u32 4294901760, %v211_v2  ;;  %v228_v6 = vand.u32 4294901760, %v213_v3  ;;  %v212_v7 = vld [vmem:[%s184_s21 + $0x10] sm:$0xff]  ;;  %s830_s10 = sshll.u32 %s1192_s11, 3  ;;  %s837_s22 = sshll.u32 %s1045_s15, 7 }
  0x3c   : > { %940 = vset.pattern.permute.xlu0 %v1059_v1  ;;  %v226_v8 = vand.u32 4294901760, %v210_v4  ;;  %v209_v9 = vld [vmem:[%s1266_s1] sm:$0xf]  ;;  %v230_v10 = vand.u32 4294901760, %v212_v7  ;;  %s206_s23 = scalar_lea.vmem [#allocation5], %s830_s10  ;;  %s1217_s4 = scalar_lea.hbm %s1268_s3, %s837_s22 }
  0x3d   : > { %v222_v11 = vsel %vm220_vm0, %v209_v9, 0  ;;  %v214_v12 = vld [vmem:[%s1267_s2] sm:$0xf]  ;;  %v838_v13 = vpack.c.bf16 %v228_v6, %v224_v5  ;;  %v305_v14 = vsub.f32 %v211_v2, %v224_v5  ;;  %v317_v15 = vsub.f32 %v213_v3, %v228_v6  ;;  %s737_s28 = sshll.u32 %s206_s23, 4  ;;  %s721_s5 = scalar_lea.sflag [#allocation4], %s1192_s11  ;;  %s1219_s28 = int_to_ptr.vmem [resolvable:$true] %s737_s28 }
  0x3e   : > { %v311_v16 = vsub.f32 %v210_v4, %v226_v8  ;;  %217 = vperm.xlu0 %940, %v214_v12   ;;  %v840_v17 = vpack.c.bf16 %v230_v10, %v226_v8  ;;  %v323_v18 = vsub.f32 %v212_v7, %v230_v10  ;;  %v293_v19 = vand.u32 4294901760, %v222_v11  ;;  %s971_s7 = scalar_lea.vmem %s1219_s28, 128  ;;  %p1276_p9 = scmp.ne.s32.totalorder %s1272_s25, 0 }
  0x3f   : > { %851 = vmatprep.subr.bf16.mxu0 %v838_v13  ;;  %839 = vmatprep.subr.bf16.mxu1 %v838_v13  ;;  %v306_v20 = vand.u32 4294901760, %v305_v14  ;;  %v318_v21 = vand.u32 4294901760, %v317_v15  ;;  %v846_v40 = vpack.c.bf16 %v317_v15, %v305_v14  ;;  %p972_p8 = scmp.ne.s32.totalorder %s1219_s28, %s971_s7  ;;  %s1060_s15 = smov [#allocation5]  }
  0x40   : > { %v312_v22 = vand.u32 4294901760, %v311_v16  ;;  %853 = vmatpush1.bf16.msra.mxu0 %v840_v17  ;;  %841 = vmatpush1.bf16.msra.mxu1 %v840_v17  ;;  %v294_v23 = vsub.f32 %v222_v11, %v293_v19  ;;  %v324_v24 = vand.u32 4294901760, %v323_v18  ;;  %v848_v41 = vpack.c.bf16 %v323_v18, %v311_v16  ;;  %s975_s18 = sshll.u32 %s1060_s15, 4  ;;  %s976_s18 = int_to_ptr.vmem [resolvable:$false] %s975_s18 }
  0x41   : > { %v307_v25 = vsub.f32 %v305_v14, %v306_v20  ;;  %v319_v26 = vsub.f32 %v317_v15, %v318_v21  ;;  %v854_v27 = vpack.c.bf16 %v318_v21, %v306_v20  ;;  %p973_p11 = pnand %p972_p8, %p1276_p9  ;;  %s977_s19 = scalar_lea.vmem %s976_s18, 256 }
  0x42   : > { %v313_v28 = vsub.f32 %v311_v16, %v312_v22  ;;  %v295_v29 = vand.u32 4294901760, %v294_v23  ;;  %v325_v30 = vsub.f32 %v323_v18, %v324_v24  ;;  %v856_v31 = vpack.c.bf16 %v324_v24, %v312_v22  ;;  %p978_p10 = scmp.lt.s32.totalorder %s1219_s28, %s976_s18  ;;  %p979_p12 = scmp.lt.s32.totalorder %s977_s19, %s971_s7 }
  0x43   : > { %v308_v32 = vand.u32 4294901760, %v307_v25  ;;  %v320_v33 = vand.u32 4294901760, %v319_v26  ;;  %855 = vmatprep.subr.bf16.mxu0 %v854_v27  ;;  %p974_p13 = pneg %p973_p11 }
  0x44   : > { %v314_v34 = vand.u32 4294901760, %v313_v28  ;;  %549 = vmatmul.mubr.f32.vlgmr.msra.gmra.mrb[0].mxu0 %v295_v29  ;;  %v296_v35 = vsub.f32 %v294_v23, %v295_v29  ;;  %v326_v36 = vand.u32 4294901760, %v325_v30  ;;  %p980_p1 = por %p979_p12, %p978_p10 }
  0x45   : > { %v842_v37 = vpack.c.bf16 %v320_v33, %v308_v32  ;;  %857 = vmatpush1.bf16.msra.mxu0 %v856_v31  ;;  %631 = vmatprep.mubr.f32.mxu0 %v1058_v0 }
  0x46   : > { %v297_v38 = vand.u32 4294901760, %v296_v35  ;;  %v844_v39 = vpack.c.bf16 %v326_v36, %v314_v34  ;;  %859 = vmatprep.subr.bf16.mxu0 %v838_v13  ;;  %p981_p3 = pnand %p980_p1, %p974_p13 }
  0x47   : > { %843 = vmatprep.subr.bf16.mxu1 %v842_v37 }
  0x48   : > { %298 = vmatmul.mubr.f32.vlgmr.msra.gmra.mrb[0].mxu1 %v297_v38 }
  0x49   : > { %845 = vmatpush1.bf16.msra.mxu1 %v844_v39  ;;  %388 = vmatprep.mubr.f32.mxu1 %v1058_v0 }
  0x4a   : > { %847 = vmatprep.subr.bf16.mxu1 %v846_v40 }
  0x4c   : > { %633 = vmatmul.mubr.f32.vlgmr.msra.gmra.mrb[0].mxu0 %v293_v19 }
  0x4d   : > { %861 = vmatpush1.bf16.msra.mxu0 %v840_v17  ;;  %707 = vmatprep.mubr.f32.mxu0 %v1058_v0 }
  0x50   : > { %390 = vmatmul.mubr.f32.vlgmr.msra.gmra.mrb[0].mxu1 %v293_v19 }
  0x51   : > { %849 = vmatpush1.bf16.msra.mxu1 %v848_v41  ;;  %468 = vmatprep.mubr.f32.mxu1 %v1058_v0 }
  0x54   : > { %709 = vmatmul.mubr.f32.vlgmr.msra.gmra.mrb[0].mxu0 %v293_v19 }
  0x58   : > { %471 = vmatmul.mubr.f32.vlgmr.msra.gmra.mrb[0].mxu1 %v294_v23 }
  0xbd   : > { %v218_v44 = vpop.permute.xlu0 %217 }
 0x127   : > { %v710_v42 = vpop.f32.mrb[0].mxu0 }
 0x128   : > { %v712_v43 = vpop.f32.mrb[1].mxu0 }
 0x12b   : > { %v472_v45 = vpop.f32.mrb[0].mxu1 }
 0x12c   : > { %v862_v46 = vadd.f32 %v472_v45, %v218_v44  ;;  %v474_v47 = vpop.f32.mrb[1].mxu1 }
 0x12d   : > { %v864_v48 = vadd.f32 %v474_v47, %v218_v44 }
 0x12e   : > { %v863_v49 = vadd.f32 %v862_v46, %v710_v42 }
 0x12f   : > { %v865_v50 = vadd.f32 %v864_v48, %v712_v43 }
 0x131   : > { %v717_v51 = vcombine.low %v863_v49, %v865_v50 }
 0x133   : > { %719 = vst [vmem:[%s206_s23] sm:$0xff] %v717_v51 }
 0x134   : > { %984 = shalt.err (!%p981_p3)
}
 0x135   : > { %s985_s11 = scalar_lea.hbm %s1217_s4, 128  ;;  %s989_s8 = scalar_lea.hbm %s1268_s3, 512 }
 0x136   : > { %p986_p4 = scmp.ne.s32.totalorder %s1217_s4, %s985_s11  ;;  %p990_p0 = scmp.lt.u32.totalorder %s1217_s4, %s1268_s3 }
 0x137   : > { %p991_p2 = scmp.lt.u32.totalorder %s989_s8, %s985_s11  ;;  %p993_p8 = scmp.lt.u32.totalorder %s985_s11, %s1217_s4 }
 0x138   : > { %p987_p6 = pnand %p986_p4, %p1276_p9 }
 0x139   : > { %p992_p5 = por %p991_p2, %p990_p0 }
 0x13a   : > { %p988_p7 = pneg %p987_p6 }
 0x13b   : > { %p994_p11 = por %p993_p8, %p992_p5 }
 0x13d   : > { %p995_p13 = pnand %p994_p11, %p988_p7 }
 0x13f   : > { %998 = shalt.err (!%p995_p13)
}
 0x140   : > { %876 = dma.vmem_to_hbm [thread:$0]  (%p1276_p9), %s1219_s28, 128, %s1217_s4, %s721_s5  }
 0x141 PF: > { %p887_p10 = scmp.ge.s32.totalorder %s1053_s17, 2  ;;  %s749_s10 = sand.u32 1, %s1033_s12  }
 0x142   : > { %p1277_p12 = scmp.ne.s32.totalorder %s1273_s27, 0  ;;  %s750_s22 = scalar_lea.sflag [#allocation4], %s749_s10 }
 0x144   : > { %p883_p1 = pnand %p887_p10, %p1277_p12 }
 0x146   : > { %1028 = dma.done.wait (!%p883_p1), %s750_s22, 128  }
 0x147   : > { %1030 = vsyncadd (!%p883_p1), %s750_s22, 4294967168  ;;  %s19_s17 = sadd.s32 1, %s1053_s17   ;;  %s1278_s12 = smov %s1037_s13 }
 0x148   : > { %p16_p3 = scmp.ge.s32.totalorder %s19_s17, 6   ;;  %s1279_s13 = smov %s1041_s14 }
 0x149   : > { %s1280_s14 = smov %s1137_s26  ;;  %s1281_s15 = smov %s1049_s16 }
 0x14a   : > { %s1282_s16 = smov %s1284_s20  ;;  %18 = sbr.rel (!%p16_p3) target bundleno = 6 (0x6), region = 77 }
 0x151   :  { %755 = vsyncpa [#allocation3], 1 }
 0x152   :  { %757 = vsyncpa [#allocation3 + $0x1], 1 }
 0x153   :  { %758 = vsyncpa [#allocation4], 1 }
 0x154   :  { %760 = vsyncpa [#allocation4 + $0x1], 1 }

</bundles_post_ra>
